<compile_context>
chip_gen: v6e
topology: v6e:2x2x1
jax: 0.10.0
libtpu: 0.0.40
codegen_flags: <defaults>
</compile_context>

<pallas_src>
import jax
import jax.numpy as jnp
from jax.experimental import pallas as pl
from jax.experimental.pallas import tpu as pltpu

# Logical sizes of the module.
IN_F, HID_F, OUT_F = 500, 250, 10
# Lane/MXU friendly padded sizes for the hidden and output dims.
HID_P, OUT_P = 256, 128

BN_EPS = 1e-5


def lenet_classifier_kernel(feat_ref, w1_ref, scale_ref, b1_ref, w2_ref, b2_ref, out_ref):
    """One batch tile: ReLU -> Linear(500,250) -> BN(eval) -> ReLU -> Linear(250,10).

    feat_ref:  (TB, 500) f32      w1_ref: (500, 256) bf16
    scale_ref: (1, 256)  f32      b1_ref: (1, 256)   f32   (BN shift with b1 folded in)
    w2_ref:    (256, 128) bf16    b2_ref: (1, 128)   f32
    out_ref:   (TB, 128) f32
    """
    # ReLU(True) in f32 (v5e VPU has no bf16 ALUs), then cast to bf16 for the MXU.
    # Dropout(0.5) is identity in eval mode.
    # TODO(synk): training-mode dropout (pltpu.prng_random_bits) not emitted; eval semantics used.
    h = jnp.maximum(feat_ref[...], 0.0).astype(jnp.bfloat16)

    # Linear(500, 250) on the bf16 MXU path with f32 accumulation; eval-mode
    # BatchNorm1d (+ Linear1 bias) applied as an f32 scale/shift on the accumulator.
    acc = jnp.dot(h, w1_ref[...], preferred_element_type=jnp.float32)
    acc = acc * scale_ref[...] + b1_ref[...]

    # ReLU(True); Dropout(0.5) identity in eval mode.
    h2 = jnp.maximum(acc, 0.0).astype(jnp.bfloat16)

    # Linear(250, 10) (output lane-padded to 128; padded columns stay zero).
    out_ref[...] = jnp.dot(h2, w2_ref[...], preferred_element_type=jnp.float32) + b2_ref[...]


def prepare_params(p):
    """Pad params to tile-friendly sizes; BN stays in f32 and is applied in-kernel."""
    # Eval-mode BatchNorm on z = x@w1 + b1:  y = z*scale + shift
    #   scale = gamma / sqrt(var + eps),  shift = beta - mean*scale + b1*scale
    scale = p["gamma"] * jax.lax.rsqrt(p["running_var"] + BN_EPS)               # (1, 250)
    shift = p["beta"] + (p["b1"] - p["running_mean"]) * scale                   # (1, 250)

    w1p = (jnp.zeros((IN_F, HID_P), jnp.bfloat16)
           .at[:, :HID_F].set(p["w1"].astype(jnp.bfloat16)))                    # (500, 256) bf16
    sclp = jnp.zeros((1, HID_P), jnp.float32).at[:, :HID_F].set(scale)          # (1, 256)
    b1p = jnp.zeros((1, HID_P), jnp.float32).at[:, :HID_F].set(shift)           # (1, 256)
    w2p = (jnp.zeros((HID_P, OUT_P), jnp.bfloat16)
           .at[:HID_F, :OUT_F].set(p["w2"].astype(jnp.bfloat16)))               # (256, 128) bf16
    b2p = jnp.zeros((1, OUT_P), jnp.float32).at[:, :OUT_F].set(p["b2"])         # (1, 128)
    return w1p, sclp, b1p, w2p, b2p


def _round_up(x, m):
    return ((x + m - 1) // m) * m


def _select_tiling(batch, tb_max):
    """Pick (batch_tile, pad_rows). Avoids wrapper-side copies whenever possible."""
    if batch % 8 != 0:
        if batch <= tb_max:
            # Single full-extent block (block dim == array dim exception): no copy.
            return batch, 0
        # Rare: large ragged batch -> pad rows to a multiple of 8.
        pad = _round_up(batch, 8) - batch
        batch += pad
    else:
        pad = 0
    tb = min(tb_max, batch)
    if batch >= 512:
        # >= 2 grid tiles so the "parallel" batch axis can shard across v7x's two
        # TensorCores; tiles stay multiples of 8 sublanes.
        tb = min(tb, _round_up(pl.cdiv(batch, 2), 8))
    return tb, pad


def lenet_classifier_forward(feat, params, *, tb_max=2048):
    """feat: (B, 500) float32. Returns logits (B, 10) float32 (eval-mode forward)."""
    B = feat.shape[0]
    w1p, sclp, b1p, w2p, b2p = prepare_params(params)

    tb, pad = _select_tiling(B, tb_max)
    if pad:
        feat = jnp.pad(feat, ((0, pad), (0, 0)))
    b_tot = B + pad
    grid = pl.cdiv(b_tot, tb)

    out = pl.pallas_call(
        lenet_classifier_kernel,
        out_shape=jax.ShapeDtypeStruct((b_tot, OUT_P), jnp.float32),
        grid_spec=pltpu.PrefetchScalarGridSpec(
            num_scalar_prefetch=0,
            grid=(grid,),
            in_specs=[
                pl.BlockSpec((tb, IN_F), lambda i: (i, 0)),       # feat tile (pipelined, f32)
                pl.BlockSpec((IN_F, HID_P), lambda i: (0, 0)),    # w1 resident (bf16)
                pl.BlockSpec((1, HID_P), lambda i: (0, 0)),       # BN scale resident (f32)
                pl.BlockSpec((1, HID_P), lambda i: (0, 0)),       # BN shift (+b1) resident (f32)
                pl.BlockSpec((HID_P, OUT_P), lambda i: (0, 0)),   # w2 resident (bf16)
                pl.BlockSpec((1, OUT_P), lambda i: (0, 0)),       # b2 resident (f32)
            ],
            out_specs=pl.BlockSpec((tb, OUT_P), lambda i: (i, 0)),
        ),
        compiler_params=pltpu.CompilerParams(
            dimension_semantics=("parallel",),          # batch tiles shard across TCs (v7x)
            vmem_limit_bytes=32 * 1024 * 1024,          # ~11 MiB used at tb=2048; ample everywhere
        ),
    )(feat, w1p, sclp, b1p, w2p, b2p)

    # Strip any row padding and the lane-padded logit columns.
    return out[:B, :OUT_F]


def init_params(key):
    """Deterministic synthetic parameters matching the module's shapes."""
    k1, k2, k3, k4 = jax.random.split(key, 4)
    return {
        # Linear(500, 250): stored as (in, out) for row-major matmul.
        "w1": jax.random.normal(k1, (IN_F, HID_F), jnp.float32) * (1.0 / jnp.sqrt(IN_F)),
        "b1": jax.random.normal(k2, (1, HID_F), jnp.float32) * 0.01,
        # BatchNorm1d(250) defaults: gamma=1, beta=0, running stats 0/1.
        "gamma": jnp.ones((1, HID_F), jnp.float32),
        "beta": jnp.zeros((1, HID_F), jnp.float32),
        "running_mean": jnp.zeros((1, HID_F), jnp.float32),
        "running_var": jnp.ones((1, HID_F), jnp.float32),
        # Linear(250, 10)
        "w2": jax.random.normal(k3, (HID_F, OUT_F), jnp.float32) * (1.0 / jnp.sqrt(HID_F)),
        "b2": jax.random.normal(k4, (1, OUT_F), jnp.float32) * 0.01,
    }


def reference_forward(feat, p):
    """Plain-JAX f32 reference for correctness check (eval-mode semantics)."""
    h = jnp.maximum(feat, 0.0)
    h = h @ p["w1"] + p["b1"]
    h = (h - p["running_mean"]) * jax.lax.rsqrt(p["running_var"] + BN_EPS) * p["gamma"] + p["beta"]
    h = jnp.maximum(h, 0.0)
    return h @ p["w2"] + p["b2"]


if __name__ == "__main__":
    key = jax.random.PRNGKey(0)
    kp, kx = jax.random.split(key)
    params = init_params(kp)

    # Small batch of 500-dim features (what the classifier's first Linear implies).
    feat = jax.random.normal(kx, (2, IN_F), jnp.float32)

    out = lenet_classifier_forward(feat, params)
    out = jax.block_until_ready(out)

    ref = reference_forward(feat, params)
    assert out.shape == (2, OUT_F), out.shape
    # bf16 matmul inputs (f32 accumulation) -> small, bounded drift vs f32 reference.
    assert jnp.allclose(out, ref, atol=3e-2, rtol=3e-2), "mismatch vs reference"

    print("KERNEL_OK")
</pallas_src>

<mosaic_0001>
module attributes {stable_mosaic.version = 11 : i64} {
  func.func @lenet_classifier_kernel(%arg0: i32, %arg1: memref<2x500xf32, #tpu.memory_space<vmem>>, %arg2: memref<500x256xbf16, #tpu.memory_space<vmem>>, %arg3: memref<1x256xf32, #tpu.memory_space<vmem>>, %arg4: memref<1x256xf32, #tpu.memory_space<vmem>>, %arg5: memref<256x128xbf16, #tpu.memory_space<vmem>>, %arg6: memref<1x128xf32, #tpu.memory_space<vmem>>, %arg7: memref<2x128xf32, #tpu.memory_space<vmem>>) attributes {dimension_semantics = [#tpu.dimension_semantics<parallel>], iteration_bounds = array<i64: 1>, scalar_prefetch = 0 : i64, scratch_operands = 0 : i64, tpu.core_type = #tpu.core_type<tc>, window_params = [{transform_indices = @transform_0, window_bounds = array<i64: 2, 500>}, {pipeline_mode = #tpu.pipeline_mode<synchronous>, transform_indices = @transform_1, window_bounds = array<i64: 500, 256>}, {pipeline_mode = #tpu.pipeline_mode<synchronous>, transform_indices = @transform_2, window_bounds = array<i64: 1, 256>}, {pipeline_mode = #tpu.pipeline_mode<synchronous>, transform_indices = @transform_3, window_bounds = array<i64: 1, 256>}, {pipeline_mode = #tpu.pipeline_mode<synchronous>, transform_indices = @transform_4, window_bounds = array<i64: 256, 128>}, {pipeline_mode = #tpu.pipeline_mode<synchronous>, transform_indices = @transform_5, window_bounds = array<i64: 1, 128>}, {transform_indices = @transform_6, window_bounds = array<i64: 2, 128>}]} {
    %c0 = arith.constant 0 : index
    %c0_0 = arith.constant 0 : index
    %0 = vector.load %arg1[%c0, %c0_0] : memref<2x500xf32, #tpu.memory_space<vmem>>, vector<2x500xf32>
    %cst = arith.constant 0.000000e+00 : f32
    %1 = vector.broadcast %cst : f32 to vector<2x500xf32>
    %2 = arith.maximumf %0, %1 : vector<2x500xf32>
    %3 = arith.truncf %2 : vector<2x500xf32> to vector<2x500xbf16>
    %c0_1 = arith.constant 0 : index
    %c0_2 = arith.constant 0 : index
    %4 = vector.load %arg2[%c0_1, %c0_2] : memref<500x256xbf16, #tpu.memory_space<vmem>>, vector<500x256xbf16>
    %cst_3 = arith.constant dense<0.000000e+00> : vector<2x256xf32>
    %5 = tpu.matmul %3, %4, %cst_3 {dimension_numbers = #tpu.dot_dimension_numbers<[1], [0], [0], [1], [0, 0, 1, 1], [], []>} : vector<2x500xbf16>, vector<500x256xbf16>, vector<2x256xf32> -> vector<2x256xf32>
    %c0_4 = arith.constant 0 : index
    %c0_5 = arith.constant 0 : index
    %6 = vector.load %arg3[%c0_4, %c0_5] : memref<1x256xf32, #tpu.memory_space<vmem>>, vector<1x256xf32>
    %7 = vector.broadcast %6 : vector<1x256xf32> to vector<2x256xf32>
    %8 = arith.mulf %5, %7 : vector<2x256xf32>
    %c0_6 = arith.constant 0 : index
    %c0_7 = arith.constant 0 : index
    %9 = vector.load %arg4[%c0_6, %c0_7] : memref<1x256xf32, #tpu.memory_space<vmem>>, vector<1x256xf32>
    %10 = vector.broadcast %9 : vector<1x256xf32> to vector<2x256xf32>
    %11 = arith.addf %8, %10 : vector<2x256xf32>
    %cst_8 = arith.constant 0.000000e+00 : f32
    %12 = vector.broadcast %cst_8 : f32 to vector<2x256xf32>
    %13 = arith.maximumf %11, %12 : vector<2x256xf32>
    %14 = arith.truncf %13 : vector<2x256xf32> to vector<2x256xbf16>
    %c0_9 = arith.constant 0 : index
    %c0_10 = arith.constant 0 : index
    %15 = vector.load %arg5[%c0_9, %c0_10] : memref<256x128xbf16, #tpu.memory_space<vmem>>, vector<256x128xbf16>
    %cst_11 = arith.constant dense<0.000000e+00> : vector<2x128xf32>
    %16 = tpu.matmul %14, %15, %cst_11 {dimension_numbers = #tpu.dot_dimension_numbers<[1], [0], [0], [1], [0, 0, 1, 1], [], []>} : vector<2x256xbf16>, vector<256x128xbf16>, vector<2x128xf32> -> vector<2x128xf32>
    %c0_12 = arith.constant 0 : index
    %c0_13 = arith.constant 0 : index
    %17 = vector.load %arg6[%c0_12, %c0_13] : memref<1x128xf32, #tpu.memory_space<vmem>>, vector<1x128xf32>
    %18 = vector.broadcast %17 : vector<1x128xf32> to vector<2x128xf32>
    %19 = arith.addf %16, %18 : vector<2x128xf32>
    %c0_14 = arith.constant 0 : index
    %c0_15 = arith.constant 0 : index
    %20 = vector.load %arg7[%c0_14, %c0_15] : memref<2x128xf32, #tpu.memory_space<vmem>>, vector<2x128xf32>
    tpu.vector_store %arg7[%c0_14, %c0_15], %19 {strides = array<i32>} : memref<2x128xf32, #tpu.memory_space<vmem>>, vector<2x128xf32>,
    return
  }
  func.func @transform_0(%arg0: i32) -> (i32, i32) {
    %c0_i32 = arith.constant 0 : i32
    %c0_i32_0 = arith.constant 0 : i32
    return %arg0, %c0_i32 : i32, i32
  }
  func.func @transform_1(%arg0: i32) -> (i32, i32) {
    %c0_i32 = arith.constant 0 : i32
    %c0_i32_0 = arith.constant 0 : i32
    %c0_i32_1 = arith.constant 0 : i32
    return %c0_i32, %c0_i32_0 : i32, i32
  }
  func.func @transform_2(%arg0: i32) -> (i32, i32) {
    %c0_i32 = arith.constant 0 : i32
    %c0_i32_0 = arith.constant 0 : i32
    %c0_i32_1 = arith.constant 0 : i32
    return %c0_i32, %c0_i32_0 : i32, i32
  }
  func.func @transform_3(%arg0: i32) -> (i32, i32) {
    %c0_i32 = arith.constant 0 : i32
    %c0_i32_0 = arith.constant 0 : i32
    %c0_i32_1 = arith.constant 0 : i32
    return %c0_i32, %c0_i32_0 : i32, i32
  }
  func.func @transform_4(%arg0: i32) -> (i32, i32) {
    %c0_i32 = arith.constant 0 : i32
    %c0_i32_0 = arith.constant 0 : i32
    %c0_i32_1 = arith.constant 0 : i32
    return %c0_i32, %c0_i32_0 : i32, i32
  }
  func.func @transform_5(%arg0: i32) -> (i32, i32) {
    %c0_i32 = arith.constant 0 : i32
    %c0_i32_0 = arith.constant 0 : i32
    %c0_i32_1 = arith.constant 0 : i32
    return %c0_i32, %c0_i32_0 : i32, i32
  }
  func.func @transform_6(%arg0: i32) -> (i32, i32) {
    %c0_i32 = arith.constant 0 : i32
    %c0_i32_0 = arith.constant 0 : i32
    return %arg0, %c0_i32 : i32, i32
  }
}

</mosaic_0001>

<bundles_post_ra>
// kernel: tpu_custom_call.1
= control target key start
LH: loop header
LB: loop body
LE: loop exit
PB: predicated region body
PF: predicated region fallthrough
CT: control target
= control target key end

     0   :  { %11 = vsyncpa [#allocation3], 0  ;;  %s1169_s0 = inlined_call_operand.hbm [shape: f32[2,500], index: 0, kind: input, shape index: {}]   ;;  %s1170_s1 = inlined_call_operand.hbm [shape: bf16[500,256], index: 1, kind: input, shape index: {}]   ;;  %s1171_s2 = inlined_call_operand.vmem [shape: f32[1,256], index: 2, kind: input, shape index: {}]   ;;  %s1172_s3 = inlined_call_operand.vmem [shape: f32[1,256], index: 3, kind: input, shape index: {}]   ;;  %s1173_s4 = inlined_call_operand.hbm [shape: bf16[256,128], index: 4, kind: input, shape index: {}]   ;;  %s1174_s5 = inlined_call_operand.vmem [shape: f32[1,128], index: 5, kind: input, shape index: {}]   ;;  %s1175_s6 = inlined_call_operand.hbm [shape: f32[2,128], index: 6, kind: output, shape index: {}]  }
   0x1   :  { %12 = vsyncpa [#allocation6], 0 }
   0x2   :  { %13 = vsyncpa [#allocation4], 0  ;;  %s1098_s21 = smov [#allocation5]  }
   0x3   :  { %s29_s22 = sshll.u32 %s1098_s21, 4  ;;  %s30_s22 = int_to_ptr.vmem [resolvable:$true] %s29_s22 }
   0x4   :  { %s1020_s23 = scalar_lea.vmem %s30_s22, 8064  ;;  %p1025_p1 = scmp.lt.s32.totalorder %s30_s22, %s30_s22 }
   0x5   :  { %p1021_p0 = scmp.ne.s32.totalorder %s30_s22, %s1020_s23  ;;  %p1026_p2 = scmp.lt.s32.totalorder %s1020_s23, %s1020_s23 }
   0x7   :  { %p1027_p3 = por %p1026_p2, %p1025_p1 }
   0x9   :  { %p1028_p4 = pnand %p1027_p3, %p1021_p0 }
   0xb   :  { %1031 = shalt.err (!%p1028_p4)
}
   0xc   :  { %s1099_s24 = smov 128   ;;  %s1100_s25 = smov 8  }
   0xd   :  { %35 = dma.hbm_to_vmem [thread:$0]  %s1170_s1, 8064, %s30_s22, [#allocation6], %s1099_s24, %s1099_s24, %s1100_s25  }
   0xe   :  { %s1101_s28 = smov [#allocation2]   ;;  %s1102_s30 = smov [#allocation7]  }
   0xf   :  { %s20_s29 = sshll.u32 %s1101_s28, 4  ;;  %s45_s7 = sshll.u32 %s1102_s30, 4  ;;  %s21_s29 = int_to_ptr.vmem [resolvable:$true] %s20_s29  ;;  %s46_s7 = int_to_ptr.vmem [resolvable:$true] %s45_s7 }
  0x10   :  { %s1040_s8 = scalar_lea.vmem %s21_s29, 128  ;;  %p1045_p6 = scmp.lt.s32.totalorder %s21_s29, %s21_s29 }
  0x11   :  { %p1041_p5 = scmp.ne.s32.totalorder %s21_s29, %s1040_s8  ;;  %p1046_p7 = scmp.lt.s32.totalorder %s1040_s8, %s1040_s8 }
  0x13   :  { %p1047_p8 = por %p1046_p7, %p1045_p6 }
  0x15   :  { %p1048_p9 = pnand %p1047_p8, %p1041_p5 }
  0x17   :  { %1051 = shalt.err (!%p1048_p9)
}
  0x18   :  { %23 = dma.hbm_to_vmem [thread:$0]  %s1169_s0, 128, %s21_s29, [#allocation3]  }
  0x19   :  { %s1060_s11 = scalar_lea.vmem %s46_s7, 2048  ;;  %p1065_p11 = scmp.lt.s32.totalorder %s46_s7, %s46_s7 }
  0x1a   :  { %p1061_p10 = scmp.ne.s32.totalorder %s46_s7, %s1060_s11  ;;  %p1066_p12 = scmp.lt.s32.totalorder %s1060_s11, %s1060_s11 }
  0x1c   :  { %p1067_p13 = por %p1066_p12, %p1065_p11 }
  0x1e   :  { %p1068_p0 = pnand %p1067_p13, %p1061_p10 }
  0x20   :  { %1071 = shalt.err (!%p1068_p0)
}
  0x21   :  { %s1103_s1 = smov 64   ;;  %s1104_s12 = smov 4  }
  0x22   :  { %51 = dma.hbm_to_vmem [thread:$0]  %s1173_s4, 2048, %s46_s7, [#allocation6], %s1103_s1, %s1103_s1, %s1104_s12  }
  0x23   :  { %1092 = dma.done.wait [#allocation3], 128  }
  0x24   :  { %1093 = vsyncadd [#allocation3], 4294967168 }
  0x25   :  { %1094 = dma.done.wait [#allocation6], 10112  }
  0x26   :  { %1095 = vsyncadd [#allocation6], 4294957184  ;;  %v901_v0 = vld [vmem:[#allocation5 + $0x74] ss:$8 sps:$4 sm:$0xff]   ;;  %v905_v2 = vld [vmem:[#allocation5 + $0x70] ss:$8 sps:$4 sm:$0xff]   ;;  %v71_v39 = vlaneseq }
  0x27   :  { %v903_v1 = vld [vmem:[#allocation5 + $0x174] ss:$8 sps:$4 sm:$0xff]   ;;  %481 = vmatprep.subr.bf16.mxu0 %v901_v0  ;;  %v906_v3 = vld [vmem:[#allocation5 + $0x170] ss:$8 sps:$4 sm:$0xff]   ;;  %v907_v4 = vld [vmem:[#allocation5 + $0x64] ss:$8 sps:$4 sm:$0xff]  }
  0x28   :  { %522 = vmatprep.subr.bf16.mxu1 %v903_v1  ;;  %482 = vmatpush1.bf16.msra.mxu0 %v905_v2  ;;  %v909_v5 = vld [vmem:[#allocation5 + $0x164] ss:$8 sps:$4 sm:$0xff]   ;;  %v911_v6 = vld [vmem:[#allocation5 + $0x60] ss:$8 sps:$4 sm:$0xff]   ;;  %v913_v8 = vld [vmem:[#allocation5 + $0x54] ss:$8 sps:$4 sm:$0xff]  }
  0x29   :  { %523 = vmatpush1.bf16.msra.mxu1 %v906_v3  ;;  %483 = vmatprep.subr.bf16.mxu0 %v907_v4  ;;  %v912_v7 = vld [vmem:[#allocation5 + $0x160] ss:$8 sps:$4 sm:$0xff]   ;;  %v915_v9 = vld [vmem:[#allocation5 + $0x154] ss:$8 sps:$4 sm:$0xff]   ;;  %v917_v10 = vld [vmem:[#allocation5 + $0x50] ss:$8 sps:$4 sm:$0xff]  }
  0x2a   :  { %524 = vmatprep.subr.bf16.mxu1 %v909_v5  ;;  %v918_v11 = vld [vmem:[#allocation5 + $0x150] ss:$8 sps:$4 sm:$0xff]   ;;  %v919_v12 = vld [vmem:[#allocation5 + $0x44] ss:$8 sps:$4 sm:$0xff]   ;;  %v923_v14 = vld [vmem:[#allocation5 + $0x40] ss:$8 sps:$4 sm:$0xff]  }
  0x2b   :  { %v921_v13 = vld [vmem:[#allocation5 + $0x144] ss:$8 sps:$4 sm:$0xff]   ;;  %v924_v15 = vld [vmem:[#allocation5 + $0x140] ss:$8 sps:$4 sm:$0xff]   ;;  %v925_v16 = vld [vmem:[#allocation5 + $0x34] ss:$8 sps:$4 sm:$0xff]  }
  0x2c   :  { %484 = vmatpush1.bf16.msra.mxu0 %v911_v6  ;;  %v927_v17 = vld [vmem:[#allocation5 + $0x134] ss:$8 sps:$4 sm:$0xff]   ;;  %v929_v18 = vld [vmem:[#allocation5 + $0x30] ss:$8 sps:$4 sm:$0xff]   ;;  %v931_v20 = vld [vmem:[#allocation5 + $0x24] ss:$8 sps:$4 sm:$0xff]  }
  0x2d   :  { %525 = vmatpush1.bf16.msra.mxu1 %v912_v7  ;;  %485 = vmatprep.subr.bf16.mxu0 %v913_v8  ;;  %v930_v19 = vld [vmem:[#allocation5 + $0x130] ss:$8 sps:$4 sm:$0xff]   ;;  %v933_v21 = vld [vmem:[#allocation5 + $0x124] ss:$8 sps:$4 sm:$0xff]   ;;  %v935_v22 = vld [vmem:[#allocation5 + $0x20] ss:$8 sps:$4 sm:$0xff]  }
  0x2e   :  { %526 = vmatprep.subr.bf16.mxu1 %v915_v9  ;;  %v936_v23 = vld [vmem:[#allocation5 + $0x120] ss:$8 sps:$4 sm:$0xff]   ;;  %v937_v24 = vld [vmem:[#allocation5 + $0x14] ss:$8 sps:$4 sm:$0xff]   ;;  %v941_v26 = vld [vmem:[#allocation5 + $0x10] ss:$8 sps:$4 sm:$0xff]  }
  0x2f   :  { %v939_v25 = vld [vmem:[#allocation5 + $0x114] ss:$8 sps:$4 sm:$0xff]   ;;  %v942_v27 = vld [vmem:[#allocation5 + $0x110] ss:$8 sps:$4 sm:$0xff]   ;;  %v943_v28 = vld [vmem:[#allocation5 + $0x4] ss:$8 sps:$4 sm:$0xff]  }
  0x30   :  { %486 = vmatpush1.bf16.msra.mxu0 %v917_v10  ;;  %v945_v29 = vld [vmem:[#allocation5 + $0x104] ss:$8 sps:$4 sm:$0xff]   ;;  %v154_v30 = vld [vmem:[#allocation5 + $0x1f0] sm:$0x33]  ;;  %v947_v31 = vld [vmem:[#allocation5] ss:$8 sps:$4 sm:$0xff]  }
  0x31   :  { %527 = vmatpush1.bf16.msra.mxu1 %v918_v11  ;;  %487 = vmatprep.subr.bf16.mxu0 %v919_v12  ;;  %v948_v32 = vld [vmem:[#allocation5 + $0x100] ss:$8 sps:$4 sm:$0xff]   ;;  %v949_v33 = vld [vmem:[#allocation5 + $0xf4] ss:$8 sps:$4 sm:$0xff]   ;;  %v850_v34 = vcombine.high %v154_v30, %v154_v30  ;;  %v849_v35 = vcombine.low %v154_v30, %v154_v30  ;;  %vm474_vm0 = vcmask 1041408   ;;  %v1151_v47 = vshrl.u32 %v71_v39, 7 }
  0x32   :  { %528 = vmatprep.subr.bf16.mxu1 %v921_v13  ;;  %v952_v36 = vld [vmem:[#allocation5 + $0xf0] ss:$8 sps:$4 sm:$0xff]   ;;  %v1105_v37 = vmov 1983009808   ;;  %v954_v41 = vld [vmem:[#allocation5 + $0xe4] ss:$8 sps:$4 sm:$0xff]  }
  0x33   :  { %v69_v38 = vunpack.c.l.s4 %v1105_v37  ;;  %v476_v40 = vsel %vm474_vm0, %v849_v35, 0  ;;  %v956_v42 = vld [vmem:[#allocation5 + $0x1e4] ss:$8 sps:$4 sm:$0xff]   ;;  %v958_v43 = vld [vmem:[#allocation5 + $0xe0] ss:$8 sps:$4 sm:$0xff]   ;;  %v64_v54 = vld [vmem:[#allocation2] sm:$0xff] }
  0x34   :  { %488 = vmatpush1.bf16.msra.mxu0 %v923_v14  ;;  %v959_v44 = vld [vmem:[#allocation5 + $0x1e0] ss:$8 sps:$4 sm:$0xff]   ;;  %v960_v45 = vld [vmem:[#allocation5 + $0xd4] ss:$8 sps:$4 sm:$0xff]   ;;  %v964_v49 = vld [vmem:[#allocation5 + $0xd0] ss:$8 sps:$4 sm:$0xff]  }
  0x35   :  { %529 = vmatpush1.bf16.msra.mxu1 %v924_v15  ;;  %489 = vmatprep.subr.bf16.mxu0 %v925_v16  ;;  %v70_v46 = vunpack.c.0.s8 %v69_v38  ;;  %v962_v48 = vld [vmem:[#allocation5 + $0x1d4] ss:$8 sps:$4 sm:$0xff]   ;;  %v965_v50 = vld [vmem:[#allocation5 + $0x1d0] ss:$8 sps:$4 sm:$0xff]   ;;  %v966_v52 = vld [vmem:[#allocation5 + $0xc4] ss:$8 sps:$4 sm:$0xff]  }
  0x36   :  { %530 = vmatprep.subr.bf16.mxu1 %v927_v17  ;;  %v968_v53 = vld [vmem:[#allocation5 + $0x1c4] ss:$8 sps:$4 sm:$0xff]   ;;  %v970_v55 = vld [vmem:[#allocation5 + $0xc0] ss:$8 sps:$4 sm:$0xff]   ;;  %v65_v56 = vmax.f32 %v64_v54, 0.0  ;;  %vm470_vm1 = vcmask 949248  }
  0x37   :  { %v73_v51 = vsub.s32 %v70_v46, %v1151_v47  ;;  %v971_v57 = vld [vmem:[#allocation5 + $0x1c0] ss:$8 sps:$4 sm:$0xff]   ;;  %v972_v58 = vld [vmem:[#allocation5 + $0xb4] ss:$8 sps:$4 sm:$0xff]   ;;  %v976_v62 = vld [vmem:[#allocation5 + $0xb0] ss:$8 sps:$4 sm:$0xff]  }
  0x38   :  { %490 = vmatpush1.bf16.msra.mxu0 %v929_v18  ;;  %v67_v60 = vcombine.high %v65_v56, %v65_v56  ;;  %v974_v61 = vld [vmem:[#allocation5 + $0x1b4] ss:$8 sps:$4 sm:$0xff]   ;;  %v977_v1 = vld [vmem:[#allocation5 + $0x1b0] ss:$8 sps:$4 sm:$0xff]   ;;  %v978_v2 = vld [vmem:[#allocation5 + $0xa4] ss:$8 sps:$4 sm:$0xff]  }
  0x39   :  { %531 = vmatpush1.bf16.msra.mxu1 %v930_v19  ;;  %491 = vmatprep.subr.bf16.mxu0 %v931_v20  ;;  %v74_v59 = vrot.slane %v65_v56, %v73_v51  ;;  %v980_v5 = vld [vmem:[#allocation5 + $0x1a4] ss:$8 sps:$4 sm:$0xff]   ;;  %v982_v6 = vld [vmem:[#allocation5 + $0xa0] ss:$8 sps:$4 sm:$0xff]   ;;  %v984_v9 = vld [vmem:[#allocation5 + $0x94] ss:$8 sps:$4 sm:$0xff]  }
  0x3a   :  { %532 = vmatprep.subr.bf16.mxu1 %v933_v21  ;;  %v81_v0 = vrot.slane %v67_v60, %v73_v51  ;;  %v983_v7 = vld [vmem:[#allocation5 + $0x1a0] ss:$8 sps:$4 sm:$0xff]   ;;  %v986_v10 = vld [vmem:[#allocation5 + $0x194] ss:$8 sps:$4 sm:$0xff]   ;;  %v988_v11 = vld [vmem:[#allocation5 + $0x90] ss:$8 sps:$4 sm:$0xff]  }
  0x3b   :  { %v82_v63 = vcombine.high %v74_v59, %v74_v59  ;;  %v989_v12 = vld [vmem:[#allocation5 + $0x190] ss:$8 sps:$4 sm:$0xff]   ;;  %v990_v13 = vld [vmem:[#allocation5 + $0x84] ss:$8 sps:$4 sm:$0xff]   ;;  %v994_v15 = vld [vmem:[#allocation5 + $0x80] ss:$8 sps:$4 sm:$0xff]   ;;  %v88_v18 = vpack.c.bf16 %v74_v59, %v74_v59 }
  0x3c   :  { %492 = vmatpush1.bf16.msra.mxu0 %v935_v22  ;;  %v83_v4 = vcombine.high %v81_v0, %v81_v0  ;;  %v992_v14 = vld [vmem:[#allocation5 + $0x184] ss:$8 sps:$4 sm:$0xff]   ;;  %v995_v16 = vld [vmem:[#allocation5 + $0x180] ss:$8 sps:$4 sm:$0xff]   ;;  %v996_v17 = vld [vmem:[#allocation7 + $0x78] sm:$0xff]   ;;  %v90_v19 = vpack.c.bf16 %v81_v0, %v81_v0  ;;  %v567_v35 = vsub.s32 0, %v1151_v47 }
  0x3d   :  { %533 = vmatpush1.bf16.msra.mxu1 %v936_v23  ;;  %493 = vmatprep.subr.bf16.mxu0 %v937_v24  ;;  %v89_v3 = vpack.c.bf16 %v82_v63, %v82_v63  ;;  %v997_v20 = vld [vmem:[#allocation7 + $0x38] sm:$0xff]   ;;  %v998_v21 = vld [vmem:[#allocation7 + $0x70] sm:$0xff]   ;;  %v1000_v23 = vld [vmem:[#allocation7 + $0x68] sm:$0xff]   ;;  %v571_v37 = vsub.s32 1, %v1151_v47  ;;  %s1106_s17 = smov [#allocation8]  }
  0x3e   :  { %534 = vmatprep.subr.bf16.mxu1 %v939_v25  ;;  %v91_v8 = vpack.c.bf16 %v83_v4, %v83_v4  ;;  %v999_v22 = vld [vmem:[#allocation7 + $0x30] sm:$0xff]   ;;  %v1001_v24 = vld [vmem:[#allocation7 + $0x28] sm:$0xff]   ;;  %v1002_v25 = vld [vmem:[#allocation7 + $0x60] sm:$0xff]   ;;  %s777_s18 = sshll.u32 %s1106_s17, 4  ;;  %s778_s18 = int_to_ptr.vmem [resolvable:$true] %s777_s18 }
  0x3f   :  { %513 = vmatprep.mubr.bf16.mxu0 %v89_v3  ;;  %v1007_v30 = vld [vmem:[#allocation7 + $0x10] sm:$0xff]   ;;  %v577_v38 = vld [vmem:[%s1172_s3] sm:$0x3]  ;;  %s1072_s19 = scalar_lea.vmem %s778_s18, 32  ;;  %p1077_p2 = scmp.lt.s32.totalorder %s778_s18, %s778_s18 }
  0x40   :  { %494 = vmatpush1.bf16.msra.mxu0 %v941_v26  ;;  %852 = vmatprep.mubr.msk.bf16.mxu1 %vm470_vm1, %v91_v8  ;;  %v1003_v26 = vld [vmem:[#allocation7 + $0x20] sm:$0xff]   ;;  %p1073_p1 = scmp.ne.s32.totalorder %s778_s18, %s1072_s19  ;;  %p1078_p3 = scmp.lt.s32.totalorder %s1072_s19, %s1072_s19 }
  0x41   :  { %535 = vmatpush1.bf16.msra.mxu1 %v942_v27  ;;  %495 = vmatprep.subr.bf16.mxu0 %v943_v28  ;;  %v1004_v27 = vld [vmem:[#allocation7 + $0x58] sm:$0xff]  }
  0x42   :  { %536 = vmatprep.subr.bf16.mxu1 %v945_v29  ;;  %v1005_v28 = vld [vmem:[#allocation7 + $0x18] sm:$0xff]   ;;  %v1006_v29 = vld [vmem:[#allocation7 + $0x50] sm:$0xff]   ;;  %p1079_p4 = por %p1078_p3, %p1077_p2 }
  0x44   :  { %496 = vmatpush1.bf16.msra.mxu0 %v947_v31  ;;  %v1008_v31 = vld [vmem:[#allocation7 + $0x48] sm:$0xff]   ;;  %p1080_p5 = pnand %p1079_p4, %p1073_p1 }
  0x45   :  { %537 = vmatpush1.bf16.msra.mxu1 %v948_v32  ;;  %497 = vmatprep.subr.bf16.mxu0 %v949_v33  ;;  %v1009_v32 = vld [vmem:[#allocation7 + $0x8] sm:$0xff]   ;;  %v1010_v33 = vld [vmem:[#allocation7 + $0x40] sm:$0xff]  }
  0x46   :  { %851 = vmatprep.subr.msk.bf16.mxu1 %vm474_vm0, %v850_v34  ;;  %v1011_v34 = vld [vmem:[#allocation7] sm:$0xff]  }
  0x48   :  { %498 = vmatpush2.bf16.msra.mxu0 %v952_v36  ;;  %v563_v36 = vld [vmem:[%s1171_s2] sm:$0x3] }
  0x49   :  { %539 = vmatpush2.bf16.msra.mxu1 %v476_v40  ;;  %499 = vmatprep.subr.bf16.mxu0 %v954_v41  ;;  %v568_v39 = vrot.slane %v563_v36, %v567_v35 }
  0x4a   :  { %540 = vmatprep.subr.bf16.mxu1 %v956_v42 }
  0x4c   :  { %500 = vmatpush2.bf16.msra.mxu0 %v958_v43  ;;  %v582_v43 = vrot.slane %v577_v38, %v567_v35 }
  0x4d   :  { %541 = vmatpush2.bf16.msra.mxu1 %v959_v44  ;;  %501 = vmatprep.subr.bf16.mxu0 %v960_v45  ;;  %v572_v44 = vrot.slane %v563_v36, %v571_v37 }
  0x4e   :  { %542 = vmatprep.subr.bf16.mxu1 %v962_v48 }
  0x50   :  { %502 = vmatpush2.bf16.msra.mxu0 %v964_v49 }
  0x51   :  { %543 = vmatpush2.bf16.msra.mxu1 %v965_v50  ;;  %503 = vmatprep.subr.bf16.mxu0 %v966_v52  ;;  %v586_v50 = vrot.slane %v577_v38, %v571_v37 }
  0x52   :  { %544 = vmatprep.subr.bf16.mxu1 %v968_v53 }
  0x54   :  { %504 = vmatpush2.bf16.msra.mxu0 %v970_v55 }
  0x55   :  { %545 = vmatpush2.bf16.msra.mxu1 %v971_v57  ;;  %505 = vmatprep.subr.bf16.mxu0 %v972_v58 }
  0x56   :  { %546 = vmatprep.subr.bf16.mxu1 %v974_v61 }
  0x58   :  { %506 = vmatpush2.bf16.msra.mxu0 %v976_v62  ;;  %v853_v62 = vld [vmem:[%s1174_s5] ss:$0 sm:$0xff] }
  0x59   :  { %547 = vmatpush2.bf16.msra.mxu1 %v977_v1  ;;  %507 = vmatprep.subr.bf16.mxu0 %v978_v2 }
  0x5a   :  { %548 = vmatprep.subr.bf16.mxu1 %v980_v5 }
  0x5c   :  { %508 = vmatpush2.bf16.msra.mxu0 %v982_v6 }
  0x5d   :  { %549 = vmatpush2.bf16.msra.mxu1 %v983_v7  ;;  %509 = vmatprep.subr.bf16.mxu0 %v984_v9 }
  0x5e   :  { %550 = vmatprep.subr.bf16.mxu1 %v986_v10 }
  0x60   :  { %510 = vmatpush2.bf16.msra.mxu0 %v988_v11 }
  0x61   :  { %551 = vmatpush2.bf16.msra.mxu1 %v989_v12  ;;  %511 = vmatprep.subr.bf16.mxu0 %v990_v13 }
  0x62   :  { %552 = vmatprep.subr.bf16.mxu1 %v992_v14 }
  0x64   :  { %512 = vmatpush2.bf16.msra.mxu0 %v994_v15 }
  0x65   :  { %553 = vmatpush2.bf16.msra.mxu1 %v995_v16  ;;  %870 = vmatprep.subr.bf16.mxu0 %v996_v17 }
  0x67   :  { %514 = vmatmul.mubr.bf16.vlgmr.msra.gmra.mxu0 %v88_v18 }
  0x68   :  { %555 = vmatmul.mubr.bf16.vlgmr.msra.gmra.mxu1 %v90_v19  ;;  %871 = vmatpush3.bf16.msra.mxu0 %v997_v20 }
  0x69   :  { %872 = vmatprep.subr.bf16.mxu0 %v998_v21 }
  0x6c   :  { %873 = vmatpush3.bf16.msra.mxu0 %v999_v22 }
  0x6d   :  { %874 = vmatprep.subr.bf16.mxu0 %v1000_v23 }
  0x70   :  { %875 = vmatpush3.bf16.msra.mxu0 %v1001_v24 }
  0x71   :  { %876 = vmatprep.subr.bf16.mxu0 %v1002_v25 }
  0x74   :  { %877 = vmatpush3.bf16.msra.mxu0 %v1003_v26 }
  0x75   :  { %878 = vmatprep.subr.bf16.mxu0 %v1004_v27 }
  0x78   :  { %879 = vmatpush3.bf16.msra.mxu0 %v1005_v28 }
  0x79   :  { %880 = vmatprep.subr.bf16.mxu0 %v1006_v29 }
  0x7c   :  { %881 = vmatpush3.bf16.msra.mxu0 %v1007_v30 }
  0x7d   :  { %882 = vmatprep.subr.bf16.mxu0 %v1008_v31 }
  0x80   :  { %883 = vmatpush3.bf16.msra.mxu0 %v1009_v32 }
  0x81   :  { %884 = vmatprep.subr.bf16.mxu0 %v1010_v33 }
  0x84   :  { %885 = vmatpush3.bf16.msra.mxu0 %v1011_v34 }
 0x127   :  { %v515_v40 = vpop.f32.mrf.mxu0 }
 0x128   :  { %v556_v41 = vpop.f32.mrf.mxu1 }
 0x129   :  { %v557_v42 = vadd.f32 %v556_v41, %v515_v40  ;;  %v517_v45 = vpop.f32.mrf.mxu0 }
 0x12a   :  { %v558_v46 = vpop.f32.mrf.mxu1 }
 0x12b   :  { %v575_v48 = vmul.f32 %v568_v39, %v557_v42  ;;  %v559_v49 = vadd.f32 %v558_v46, %v517_v45  ;;  %v519_v51 = vpop.f32.mrf.mxu0 }
 0x12c   :  { %v560_v52 = vpop.f32.mrf.mxu1 }
 0x12d   :  { %v589_v53 = vadd.f32 %v582_v43, %v575_v48  ;;  %v576_v54 = vmul.f32 %v572_v44, %v559_v49  ;;  %v520_v47 = vpop.f32.mrf.mxu0 }
 0x12e   :  { %v561_v55 = vpop.f32.mrf.mxu1 }
 0x12f   :  { %v590_v56 = vadd.f32 %v586_v50, %v576_v54  ;;  %v591_v57 = vmax.f32 %v589_v53, 0.0 }
 0x131   :  { %v592_v58 = vmax.f32 %v590_v56, 0.0  ;;  %v593_v60 = vpack.c.bf16 %v591_v57, %v591_v57 }
 0x133   :  { %v594_v59 = vpack.c.bf16 %v592_v58, %v592_v58 }
 0x135   :  { %762 = vmatprep.mubr.bf16.mxu0 %v594_v59 }
 0x136   :  { %763 = vmatmul.mubr.bf16.vlgmr.msra.gmra.mxu0 %v593_v60 }
 0x1f6   :  { %v886_v61 = vpop.f32.mrf.mxu0 }
 0x1f8   :  { %v887_v63 = vpop.f32.mrf.mxu0 }
 0x1f9   :  { %v888_v0 = vadd.f32 %v887_v63, %v886_v61 }
 0x1fa   :  { %v889_v1 = vpop.f32.mrf.mxu0 }
 0x1fb   :  { %v765_v2 = vadd.f32 %v888_v0, %v853_v62 }
 0x1fc   :  { %v890_v3 = vpop.f32.mrf.mxu0 }
 0x1fd   :  { %770 = vst [vmem:[#allocation8] sm:$0x3] %v765_v2 }
 0x1fe   :  { %1083 = shalt.err (!%p1080_p5)
}
 0x1ff   :  { %780 = dma.vmem_to_hbm [thread:$0]  %s778_s18, 32, %s1175_s6, [#allocation4]  }
 0x200   :  { %1096 = dma.done.wait [#allocation4], 32  }
 0x201   :  { %1097 = vsyncadd [#allocation4], 4294967264 }
 0x202   :  { %784 = vsyncpa [#allocation3], 1 }
 0x203   :  { %785 = vsyncpa [#allocation6], 1 }
 0x204   :  { %786 = vsyncpa [#allocation4], 1 }

</bundles_post_ra>
